<compile_context>
chip_gen: v7x
topology: tpu7x:2x2x1
jax: 0.10.0
libtpu: 0.0.40
codegen_flags: <defaults>
</compile_context>

<pallas_src>
import functools

import numpy as np
import jax
import jax.numpy as jnp
from jax.experimental import pallas as pl
from jax.experimental.pallas import tpu as pltpu

C1 = 0.01 ** 2
C2 = 0.03 ** 2


# ---------------------------------------------------------------------------
# Trace-time constants (numpy): Gaussian taps and banded Toeplitz matrices.
# ---------------------------------------------------------------------------
def gaussian_1d(window_size: int, sigma: float = 1.5) -> np.ndarray:
    xs = np.arange(window_size, dtype=np.float64)
    g = np.exp(-((xs - window_size // 2) ** 2) / (2.0 * sigma ** 2))
    return (g / g.sum()).astype(np.float32)


def band_matrix(length: int, g: np.ndarray, pad: int) -> np.ndarray:
    """T[j, x] = g[j - x + pad] for |j - x| <= pad, else 0.

    (X @ T)[i, x] == 1D "same" cross-correlation of row i of X with g
    (zero padding at the edges), matching F.conv2d(padding=ws//2)."""
    ws = g.shape[0]
    idx = np.arange(length)
    k = idx[:, None] - idx[None, :] + pad
    valid = (k >= 0) & (k < ws)
    gpad = np.concatenate([g, np.zeros(1, np.float32)])
    return (gpad[np.clip(k, 0, ws)] * valid.astype(np.float32)).astype(np.float32)


def choose_packing(nc: int, h: int, w: int,
                   lane_target: int = 128, row_target: int = 128):
    """Pick (lw, bp): planes packed along lanes / rows of one grid block."""
    # Lane packing first — the biggest lever when W < 128.
    lw = 1
    for d in range(1, nc + 1):
        if nc % d == 0 and d * w <= lane_target:
            lw = d
    nr = nc // lw
    # Row packing: fill the MXU contraction (~128 rows) but never more; bp=1
    # once H >= 128 (then the vertical band has no block-diagonal waste).
    if h >= row_target:
        bp = 1
    else:
        cands = [d for d in range(1, nr + 1) if nr % d == 0 and d * h <= row_target]
        # Prefer >=2 grid blocks (DMA/compute overlap; v7x megacore) when possible.
        multi = [d for d in cands if nr // d >= 2 and (d * h) % 8 == 0]
        bp = max(multi) if multi else max(cands)
    # (8,128) constraint: with multiple row-blocks the block height must be 8-aligned.
    if (nr // bp) > 1 and (bp * h) % 8 != 0:
        bp = nr
    return lw, bp


# ---------------------------------------------------------------------------
# Kernel: one block of packed planes (R rows x Wl lanes) -> lane-dense partial sum.
# ---------------------------------------------------------------------------
def _ssim_kernel(img1_ref, img2_ref, bw_ref, av_ref, out_ref):
    x1 = img1_ref[...].astype(jnp.float32)      # (R, Wl)
    x2 = img2_ref[...].astype(jnp.float32)
    bw = bw_ref[...]                            # (Wl, Wl) lane-block-diag horizontal band
    av = av_ref[...]                            # (R, R)   row-block-diag vertical band
    r, wl = x1.shape

    # e11/e22 fusion: downstream only needs sigma1_sq + sigma2_sq.
    sq = x1 * x1 + x2 * x2
    pr = x1 * x2

    hi = jax.lax.Precision.HIGHEST  # keep HIGHEST: sigma = E[x^2] - mu^2 cancellation
    # Horizontal pass: all 4 operands in one MXU matmul (M=4R, K=N=Wl).
    stacked = jnp.concatenate([x1, x2, sq, pr], axis=0)                    # (4R, Wl)
    yh = jnp.dot(stacked, bw, precision=hi, preferred_element_type=jnp.float32)
    # Vertical pass: lane-concat the intermediates -> one matmul with N = 4*Wl.
    yv_in = jnp.concatenate(
        [yh[0 * r:1 * r], yh[1 * r:2 * r], yh[2 * r:3 * r], yh[3 * r:4 * r]], axis=1)
    yv = jnp.dot(av, yv_in, precision=hi, preferred_element_type=jnp.float32)  # (R, 4Wl)

    mu1 = yv[:, 0 * wl:1 * wl]
    mu2 = yv[:, 1 * wl:2 * wl]
    e_sq = yv[:, 2 * wl:3 * wl]      # conv(x1^2 + x2^2)
    e_12 = yv[:, 3 * wl:4 * wl]      # conv(x1 * x2)

    mu1_sq = mu1 * mu1
    mu2_sq = mu2 * mu2
    mu1_mu2 = mu1 * mu2
    mu_sq_sum = mu1_sq + mu2_sq
    sigma_sum = e_sq - mu_sq_sum     # sigma1_sq + sigma2_sq
    sigma12 = e_12 - mu1_mu2

    ssim_map = ((2.0 * mu1_mu2 + C1) * (2.0 * sigma12 + C2)) / (
        (mu_sq_sum + C1) * (sigma_sum + C2))

    # Lane-dense partial sum per block (unmasked vst); wrapper finishes the reduce.
    out_ref[...] = jnp.sum(ssim_map, axis=0, keepdims=True).reshape(out_ref.shape)


def ssim_loss_pallas(img1: jnp.ndarray, img2: jnp.ndarray,
                     window_size: int = 11) -> jnp.ndarray:
    assert img1.shape == img2.shape and img1.ndim == 4
    n, c, h, w = img1.shape
    nc = n * c
    pad = window_size // 2

    g = gaussian_1d(window_size)
    lw, bp = choose_packing(nc, h, w)
    wl = lw * w                       # lane width of a block
    r = bp * h                        # row height of a block
    num_blocks = nc // (lw * bp)

    # Banded "same"-conv Toeplitz matrices, block-diagonal over the packed plane
    # groups so neighbouring planes never bleed into each other.
    bw = np.kron(np.eye(lw, dtype=np.float32), band_matrix(w, g, pad))       # (Wl, Wl)
    av = np.kron(np.eye(bp, dtype=np.float32), band_matrix(h, g, pad).T)     # (R, R)

    def pack(x):
        # (N,C,H,W) -> (blocks, bp, lw, H, W) -> (blocks, bp, H, lw, W) -> (rows, lanes)
        # The transpose is a no-op whenever lw == 1 (i.e. W >= 128).
        x = x.reshape(num_blocks, bp, lw, h, w)
        x = jnp.transpose(x, (0, 1, 3, 2, 4))
        return x.reshape(num_blocks * r, wl)

    x1 = pack(img1)
    x2 = pack(img2)

    partial = pl.pallas_call(
        _ssim_kernel,
        out_shape=jax.ShapeDtypeStruct((num_blocks, 1, wl), jnp.float32),
        grid_spec=pltpu.PrefetchScalarGridSpec(
            num_scalar_prefetch=0,
            grid=(num_blocks,),
            in_specs=[
                pl.BlockSpec((r, wl), lambda i: (i, 0)),
                pl.BlockSpec((r, wl), lambda i: (i, 0)),
                pl.BlockSpec((wl, wl), lambda i: (0, 0)),   # constant band (fetched once)
                pl.BlockSpec((r, r), lambda i: (0, 0)),     # constant band (fetched once)
            ],
            out_specs=pl.BlockSpec((1, 1, wl), lambda i: (i, 0, 0)),
        ),
        compiler_params=pltpu.CompilerParams(
            dimension_semantics=("parallel",),
            vmem_limit_bytes=32 * 1024 * 1024,
        ),
    )(x1, x2, jnp.asarray(bw), jnp.asarray(av))

    # loss = -mean(ssim_map) over all (N, C, H, W) elements.
    return -(jnp.sum(partial) / float(nc * h * w))


# ---------------------------------------------------------------------------
# Pure-JAX reference mirroring the PyTorch module (mask=None).
# ---------------------------------------------------------------------------
def ssim_loss_ref(img1, img2, window_size: int = 11):
    n, c, h, w = img1.shape
    pad = window_size // 2
    g = gaussian_1d(window_size)
    w2d = jnp.asarray(np.outer(g, g).astype(np.float32))
    window = jnp.broadcast_to(w2d, (c, 1, window_size, window_size))

    def conv(x):
        return jax.lax.conv_general_dilated(
            x, window, window_strides=(1, 1),
            padding=[(pad, pad), (pad, pad)],
            dimension_numbers=("NCHW", "OIHW", "NCHW"),
            feature_group_count=c,
            precision=jax.lax.Precision.HIGHEST)

    img1 = img1.astype(jnp.float32)
    img2 = img2.astype(jnp.float32)
    mu1 = conv(img1)
    mu2 = conv(img2)
    mu1_sq, mu2_sq, mu1_mu2 = mu1 * mu1, mu2 * mu2, mu1 * mu2
    sigma1_sq = conv(img1 * img1) - mu1_sq
    sigma2_sq = conv(img2 * img2) - mu2_sq
    sigma12 = conv(img1 * img2) - mu1_mu2
    ssim_map = ((2 * mu1_mu2 + C1) * (2 * sigma12 + C2)) / (
        (mu1_sq + mu2_sq + C1) * (sigma1_sq + sigma2_sq + C2))
    return -jnp.mean(ssim_map)


if __name__ == "__main__":
    key = jax.random.PRNGKey(0)
    k1, k2 = jax.random.split(key)
    # Small NCHW inputs: batch=2, channels=4, spatial=16x16 (values in [0, 1]).
    img1 = jax.random.uniform(k1, (2, 4, 16, 16), dtype=jnp.float32)
    img2 = jax.random.uniform(k2, (2, 4, 16, 16), dtype=jnp.float32)

    loss_fn = jax.jit(functools.partial(ssim_loss_pallas, window_size=11))
    loss = jax.block_until_ready(loss_fn(img1, img2))
    ref = jax.block_until_ready(ssim_loss_ref(img1, img2, window_size=11))

    assert jnp.isfinite(loss), "kernel produced non-finite loss"
    assert jnp.allclose(loss, ref, rtol=1e-3, atol=1e-4), (loss, ref)
    print("KERNEL_OK")
</pallas_src>

<mosaic_0001>
module attributes {stable_mosaic.version = 11 : i64} {
  func.func @_ssim_kernel(%arg0: i32, %arg1: memref<16x128xf32, #tpu.memory_space<vmem>>, %arg2: memref<16x128xf32, #tpu.memory_space<vmem>>, %arg3: memref<128x128xf32, #tpu.memory_space<vmem>>, %arg4: memref<16x16xf32, #tpu.memory_space<vmem>>, %arg5: memref<1x1x128xf32, #tpu.memory_space<vmem>>) attributes {dimension_semantics = [#tpu.dimension_semantics<parallel>], iteration_bounds = array<i64: 1>, scalar_prefetch = 0 : i64, scratch_operands = 0 : i64, tpu.core_type = #tpu.core_type<tc>, window_params = [{transform_indices = @transform_0, window_bounds = array<i64: 16, 128>}, {transform_indices = @transform_1, window_bounds = array<i64: 16, 128>}, {pipeline_mode = #tpu.pipeline_mode<synchronous>, transform_indices = @transform_2, window_bounds = array<i64: 128, 128>}, {pipeline_mode = #tpu.pipeline_mode<synchronous>, transform_indices = @transform_3, window_bounds = array<i64: 16, 16>}, {transform_indices = @transform_4, window_bounds = array<i64: 1, 1, 128>}]} {
    %c0 = arith.constant 0 : index
    %c0_0 = arith.constant 0 : index
    %0 = vector.load %arg1[%c0, %c0_0] : memref<16x128xf32, #tpu.memory_space<vmem>>, vector<16x128xf32>
    %c0_1 = arith.constant 0 : index
    %c0_2 = arith.constant 0 : index
    %1 = vector.load %arg2[%c0_1, %c0_2] : memref<16x128xf32, #tpu.memory_space<vmem>>, vector<16x128xf32>
    %c0_3 = arith.constant 0 : index
    %c0_4 = arith.constant 0 : index
    %2 = vector.load %arg3[%c0_3, %c0_4] : memref<128x128xf32, #tpu.memory_space<vmem>>, vector<128x128xf32>
    %c0_5 = arith.constant 0 : index
    %c0_6 = arith.constant 0 : index
    %3 = vector.load %arg4[%c0_5, %c0_6] : memref<16x16xf32, #tpu.memory_space<vmem>>, vector<16x16xf32>
    %4 = arith.mulf %0, %0 : vector<16x128xf32>
    %5 = arith.mulf %1, %1 : vector<16x128xf32>
    %6 = arith.addf %4, %5 : vector<16x128xf32>
    %7 = arith.mulf %0, %1 : vector<16x128xf32>
    %8 = tpu.concatenate %0, %1, %6, %7 in 0 : vector<16x128xf32>, vector<16x128xf32>, vector<16x128xf32>, vector<16x128xf32> -> vector<64x128xf32>
    %cst = arith.constant dense<0.000000e+00> : vector<64x128xf32>
    %9 = tpu.matmul %8, %2, %cst {dimension_numbers = #tpu.dot_dimension_numbers<[1], [0], [0], [1], [0, 0, 1, 1], [], []>, precision = #tpu.contract_precision<fp32>} : vector<64x128xf32>, vector<128x128xf32>, vector<64x128xf32> -> vector<64x128xf32>
    %10 = vector.extract_strided_slice %9 {offsets = [0, 0], sizes = [16, 128], strides = [1, 1]} : vector<64x128xf32> to vector<16x128xf32>
    %11 = vector.extract_strided_slice %9 {offsets = [16, 0], sizes = [16, 128], strides = [1, 1]} : vector<64x128xf32> to vector<16x128xf32>
    %12 = vector.extract_strided_slice %9 {offsets = [32, 0], sizes = [16, 128], strides = [1, 1]} : vector<64x128xf32> to vector<16x128xf32>
    %13 = vector.extract_strided_slice %9 {offsets = [48, 0], sizes = [16, 128], strides = [1, 1]} : vector<64x128xf32> to vector<16x128xf32>
    %14 = tpu.concatenate %10, %11, %12, %13 in 1 : vector<16x128xf32>, vector<16x128xf32>, vector<16x128xf32>, vector<16x128xf32> -> vector<16x512xf32>
    %cst_7 = arith.constant dense<0.000000e+00> : vector<16x512xf32>
    %15 = tpu.matmul %3, %14, %cst_7 {dimension_numbers = #tpu.dot_dimension_numbers<[1], [0], [0], [1], [0, 0, 1, 1], [], []>, precision = #tpu.contract_precision<fp32>} : vector<16x16xf32>, vector<16x512xf32>, vector<16x512xf32> -> vector<16x512xf32>
    %16 = vector.extract_strided_slice %15 {offsets = [0, 0], sizes = [16, 128], strides = [1, 1]} : vector<16x512xf32> to vector<16x128xf32>
    %17 = vector.extract_strided_slice %15 {offsets = [0, 128], sizes = [16, 128], strides = [1, 1]} : vector<16x512xf32> to vector<16x128xf32>
    %18 = vector.extract_strided_slice %15 {offsets = [0, 256], sizes = [16, 128], strides = [1, 1]} : vector<16x512xf32> to vector<16x128xf32>
    %19 = vector.extract_strided_slice %15 {offsets = [0, 384], sizes = [16, 128], strides = [1, 1]} : vector<16x512xf32> to vector<16x128xf32>
    %20 = arith.mulf %16, %16 : vector<16x128xf32>
    %21 = arith.mulf %17, %17 : vector<16x128xf32>
    %22 = arith.mulf %16, %17 : vector<16x128xf32>
    %23 = arith.addf %20, %21 : vector<16x128xf32>
    %24 = arith.subf %18, %23 : vector<16x128xf32>
    %25 = arith.subf %19, %22 : vector<16x128xf32>
    %cst_8 = arith.constant 2.000000e+00 : f32
    %26 = vector.broadcast %cst_8 : f32 to vector<16x128xf32>
    %27 = arith.mulf %26, %22 : vector<16x128xf32>
    %cst_9 = arith.constant 9.99999974E-5 : f32
    %28 = vector.broadcast %cst_9 : f32 to vector<16x128xf32>
    %29 = arith.addf %27, %28 : vector<16x128xf32>
    %cst_10 = arith.constant 2.000000e+00 : f32
    %30 = vector.broadcast %cst_10 : f32 to vector<16x128xf32>
    %31 = arith.mulf %30, %25 : vector<16x128xf32>
    %cst_11 = arith.constant 8.99999984E-4 : f32
    %32 = vector.broadcast %cst_11 : f32 to vector<16x128xf32>
    %33 = arith.addf %31, %32 : vector<16x128xf32>
    %34 = arith.mulf %29, %33 : vector<16x128xf32>
    %cst_12 = arith.constant 9.99999974E-5 : f32
    %35 = vector.broadcast %cst_12 : f32 to vector<16x128xf32>
    %36 = arith.addf %23, %35 : vector<16x128xf32>
    %cst_13 = arith.constant 8.99999984E-4 : f32
    %37 = vector.broadcast %cst_13 : f32 to vector<16x128xf32>
    %38 = arith.addf %24, %37 : vector<16x128xf32>
    %39 = arith.mulf %36, %38 : vector<16x128xf32>
    %40 = arith.divf %34, %39 : vector<16x128xf32>
    %cst_14 = arith.constant dense<0.000000e+00> : vector<128xf32>
    %41 = vector.multi_reduction <add>, %40, %cst_14 [0] : vector<16x128xf32> to vector<128xf32>
    %42 = vector.shape_cast %41 : vector<128xf32> to vector<1x128xf32>
    %43 = vector.shape_cast %42 : vector<1x128xf32> to vector<1x1x128xf32>
    %c0_15 = arith.constant 0 : index
    %c0_16 = arith.constant 0 : index
    %c0_17 = arith.constant 0 : index
    %44 = vector.load %arg5[%c0_15, %c0_16, %c0_17] : memref<1x1x128xf32, #tpu.memory_space<vmem>>, vector<1x1x128xf32>
    tpu.vector_store %arg5[%c0_15, %c0_16, %c0_17], %43 {strides = array<i32>} : memref<1x1x128xf32, #tpu.memory_space<vmem>>, vector<1x1x128xf32>,
    return
  }
  func.func @transform_0(%arg0: i32) -> (i32, i32) {
    %c0_i32 = arith.constant 0 : i32
    %c0_i32_0 = arith.constant 0 : i32
    return %arg0, %c0_i32 : i32, i32
  }
  func.func @transform_1(%arg0: i32) -> (i32, i32) {
    %c0_i32 = arith.constant 0 : i32
    %c0_i32_0 = arith.constant 0 : i32
    return %arg0, %c0_i32 : i32, i32
  }
  func.func @transform_2(%arg0: i32) -> (i32, i32) {
    %c0_i32 = arith.constant 0 : i32
    %c0_i32_0 = arith.constant 0 : i32
    %c0_i32_1 = arith.constant 0 : i32
    return %c0_i32, %c0_i32_0 : i32, i32
  }
  func.func @transform_3(%arg0: i32) -> (i32, i32) {
    %c0_i32 = arith.constant 0 : i32
    %c0_i32_0 = arith.constant 0 : i32
    %c0_i32_1 = arith.constant 0 : i32
    return %c0_i32, %c0_i32_0 : i32, i32
  }
  func.func @transform_4(%arg0: i32) -> (i32, i32, i32) {
    %c0_i32 = arith.constant 0 : i32
    %c0_i32_0 = arith.constant 0 : i32
    %c0_i32_1 = arith.constant 0 : i32
    return %arg0, %c0_i32, %c0_i32_0 : i32, i32, i32
  }
}

</mosaic_0001>

<bundles_post_ra>
// kernel: ssim_loss_pallas.1
= control target key start
LH: loop header
LB: loop body
LE: loop exit
PB: predicated region body
PF: predicated region fallthrough
CT: control target
= control target key end

     0   :  { %vm989_vm0 = vcmask 130048   ;;  %s3480_s2 = inlined_call_operand.vmem [shape: f32[128,128], index: 2, kind: input, shape index: {}]   ;;  %s3481_s0 = inlined_call_operand.vmem [shape: f32[16,128], index: 0, kind: input, shape index: {}]   ;;  %s3482_s1 = inlined_call_operand.vmem [shape: f32[16,128], index: 1, kind: input, shape index: {}]   ;;  %s3483_s3 = inlined_call_operand.vmem [shape: f32[16,16], index: 3, kind: input, shape index: {}]   ;;  %s3484_s4 = inlined_call_operand.vmem [shape: f32[1,1,128], index: 4, kind: output, shape index: {}]  }
   0x1   :  { %v21_v0 = vld [vmem:[%s3480_s2] sm:$0xff]  ;;  %v22_v1 = vld [vmem:[%s3480_s2 + $0x8] sm:$0xff]  ;;  %v23_v2 = vld [vmem:[%s3480_s2 + $0x10] sm:$0xff] }
   0x2   :  { %v48_v3 = vand.u32 4294901760, %v21_v0  ;;  %v51_v4 = vand.u32 4294901760, %v22_v1  ;;  %v24_v5 = vld [vmem:[%s3480_s2 + $0x18] sm:$0xff]  ;;  %v54_v6 = vand.u32 4294901760, %v23_v2  ;;  %v25_v7 = vld [vmem:[%s3480_s2 + $0x20] sm:$0xff]  ;;  %v26_v8 = vld [vmem:[%s3480_s2 + $0x28] sm:$0xff] }
   0x3   :  { %v57_v9 = vand.u32 4294901760, %v24_v5  ;;  %v60_v10 = vand.u32 4294901760, %v25_v7  ;;  %v63_v11 = vand.u32 4294901760, %v26_v8  ;;  %v27_v16 = vld [vmem:[%s3480_s2 + $0x30] sm:$0xff]  ;;  %v28_v17 = vld [vmem:[%s3480_s2 + $0x38] sm:$0xff]  ;;  %v29_v37 = vld [vmem:[%s3480_s2 + $0x40] sm:$0xff] }
   0x4   :  { %v2913_v12 = vpack.c.bf16 %v51_v4, %v48_v3  ;;  %v2915_v13 = vsub.f32 %v21_v0, %v48_v3  ;;  %v2917_v14 = vsub.f32 %v22_v1, %v51_v4  ;;  %v2919_v15 = vsub.f32 %v23_v2, %v54_v6  ;;  %v30_v38 = vld [vmem:[%s3480_s2 + $0x48] sm:$0xff]  ;;  %v2975_v43 = vld [vmem:[%s3480_s2 + $0x50] sm:$0xff]  ;;  %v32_v52 = vld [vmem:[%s3480_s2 + $0x58] sm:$0xff] }
   0x5   :  { %v2927_v18 = vpack.c.bf16 %v57_v9, %v54_v6  ;;  %v2929_v19 = vsub.f32 %v24_v5, %v57_v9  ;;  %v2931_v20 = vsub.f32 %v25_v7, %v60_v10  ;;  %v2936_v24 = vsub.f32 %v26_v8, %v63_v11  ;;  %v2993_v57 = vld [vmem:[%s3480_s2 + $0x60] sm:$0xff]  ;;  %v2998_v58 = vld [vmem:[%s3480_s2 + $0x68] sm:$0xff] }
   0x6   :  { %v211_v21 = vand.u32 4294901760, %v2915_v13  ;;  %v218_v22 = vand.u32 4294901760, %v2917_v14  ;;  %v225_v23 = vand.u32 4294901760, %v2919_v15  ;;  %2529 = vmatprep.subr.bf16.mxu1 %v2913_v12  ;;  %v66_v27 = vand.u32 4294901760, %v27_v16 }
   0x7   :  { %v232_v25 = vand.u32 4294901760, %v2929_v19  ;;  %v239_v26 = vand.u32 4294901760, %v2931_v20  ;;  %v69_v28 = vand.u32 4294901760, %v28_v17  ;;  %2531 = vmatpush3.bf16.msra.mxu1 %v2913_v12  ;;  %v246_v32 = vand.u32 4294901760, %v2936_v24 }
   0x8   :  { %v212_v29 = vsub.f32 %v2915_v13, %v211_v21  ;;  %v219_v30 = vsub.f32 %v2917_v14, %v218_v22  ;;  %v226_v31 = vsub.f32 %v2919_v15, %v225_v23  ;;  %2533 = vmatprep.subr.bf16.mxu1 %v2927_v18  ;;  %v2956_v34 = vpack.c.bf16 %v63_v11, %v60_v10  ;;  %v35_v10 = vld [vmem:[%s3480_s2 + $0x70] sm:$0xff] }
   0x9   :  { %v233_v33 = vsub.f32 %v2929_v19, %v232_v25  ;;  %v240_v35 = vsub.f32 %v2931_v20, %v239_v26  ;;  %v2961_v36 = vsub.f32 %v27_v16, %v66_v27  ;;  %v247_v42 = vsub.f32 %v2936_v24, %v246_v32 }
   0xa   :  { %v213_v39 = vand.u32 4294901760, %v212_v29  ;;  %v220_v40 = vand.u32 4294901760, %v219_v30  ;;  %v227_v41 = vand.u32 4294901760, %v226_v31  ;;  %v2978_v47 = vsub.f32 %v28_v17, %v69_v28 }
   0xb   :  { %v234_v44 = vand.u32 4294901760, %v233_v33  ;;  %v241_v45 = vand.u32 4294901760, %v240_v35  ;;  %v253_v46 = vand.u32 4294901760, %v2961_v36  ;;  %2535 = vmatpush3.bf16.msra.mxu1 %v2927_v18  ;;  %v248_v49 = vand.u32 4294901760, %v247_v42  ;;  %v17_v35 = vld [vmem:[%s3481_s0] sm:$0xff] }
   0xc   :  { %v2560_v48 = vpack.c.bf16 %v220_v40, %v213_v39  ;;  %v72_v50 = vand.u32 4294901760, %v29_v37  ;;  %v75_v51 = vand.u32 4294901760, %v30_v38  ;;  %2537 = vmatprep.subr.bf16.mxu1 %v2956_v34  ;;  %v260_v55 = vand.u32 4294901760, %v2978_v47 }
   0xd   :  { %v2564_v53 = vpack.c.bf16 %v234_v44, %v227_v41  ;;  %v254_v54 = vsub.f32 %v2961_v36, %v253_v46  ;;  %v78_v56 = vand.u32 4294901760, %v2975_v43  ;;  %v2568_v59 = vpack.c.bf16 %v248_v49, %v241_v45 }
   0xe   :  { %2561 = vmatprep.subr.bf16.mxu0 %v2560_v48  ;;  %v3000_v60 = vpack.c.bf16 %v69_v28, %v66_v27  ;;  %v3002_v61 = vsub.f32 %v29_v37, %v72_v50  ;;  %v3004_v62 = vsub.f32 %v30_v38, %v75_v51  ;;  %v261_v0 = vsub.f32 %v2978_v47, %v260_v55  ;;  %v36_v28 = vld [vmem:[%s3480_s2 + $0x78] sm:$0xff] }
   0xf   :  { %2563 = vmatpush3.bf16.msra.mxu0 %v2560_v48  ;;  %v255_v63 = vand.u32 4294901760, %v254_v54  ;;  %v81_v1 = vand.u32 4294901760, %v32_v52  ;;  %v3010_v2 = vsub.f32 %v2975_v43, %v78_v56  ;;  %2539 = vmatpush3.bf16.msra.mxu1 %v2956_v34  ;;  %v84_v5 = vand.u32 4294901760, %v2993_v57 }
  0x10   :  { %2565 = vmatprep.subr.bf16.mxu0 %v2564_v53  ;;  %v267_v3 = vand.u32 4294901760, %v3002_v61  ;;  %v274_v4 = vand.u32 4294901760, %v3004_v62  ;;  %v87_v6 = vand.u32 4294901760, %v2998_v58  ;;  %2541 = vmatprep.subr.bf16.mxu1 %v3000_v60  ;;  %v262_v7 = vand.u32 4294901760, %v261_v0 }
  0x11   :  { %v281_v8 = vand.u32 4294901760, %v3010_v2  ;;  %v3019_v9 = vsub.f32 %v32_v52, %v81_v1  ;;  %v3024_v11 = vpack.c.bf16 %v75_v51, %v72_v50  ;;  %v3033_v27 = vsub.f32 %v2993_v57, %v84_v5 }
  0x12   :  { %v268_v16 = vsub.f32 %v3002_v61, %v267_v3  ;;  %v275_v17 = vsub.f32 %v3004_v62, %v274_v4  ;;  %v2572_v29 = vpack.c.bf16 %v262_v7, %v255_v63  ;;  %v3043_v33 = vsub.f32 %v2998_v58, %v87_v6  ;;  %v18_v7 = vld [vmem:[%s3481_s0 + $0x8] sm:$0xff] }
  0x13   :  { %2567 = vmatpush3.bf16.msra.mxu0 %v2564_v53  ;;  %v282_v30 = vsub.f32 %v3010_v2, %v281_v8  ;;  %v288_v31 = vand.u32 4294901760, %v3019_v9  ;;  %2543 = vmatpush3.bf16.msra.mxu1 %v3000_v60  ;;  %v3488_v39 = vand.u32 4294901760, %v3033_v27  ;;  %v90_v40 = vand.u32 4294901760, %v35_v10 }
  0x14   :  { %2569 = vmatprep.subr.bf16.mxu0 %v2568_v59  ;;  %v269_v37 = vand.u32 4294901760, %v268_v16  ;;  %v276_v38 = vand.u32 4294901760, %v275_v17  ;;  %2545 = vmatprep.subr.bf16.mxu1 %v3024_v11  ;;  %v3487_v42 = vand.u32 4294901760, %v3043_v33  ;;  %v93_v43 = vand.u32 4294901760, %v36_v28 }
  0x15   :  { %v289_v41 = vsub.f32 %v3019_v9, %v288_v31  ;;  %v296_v44 = vsub.f32 %v3033_v27, %v3488_v39  ;;  %v3058_v45 = vsub.f32 %v35_v10, %v90_v40  ;;  %v3060_v48 = vand.u32 4294901760, %v17_v35  ;;  %v20_v10 = vld [vmem:[%s3482_s1 + $0x8] sm:$0xff] }
  0x16   :  { %v3062_v49 = vpack.c.bf16 %v81_v1, %v78_v56  ;;  %v303_v50 = vsub.f32 %v3043_v33, %v3487_v42  ;;  %v3067_v51 = vsub.f32 %v36_v28, %v93_v43  ;;  %v2576_v52 = vpack.c.bf16 %v276_v38, %v269_v37  ;;  %v19_v56 = vld [vmem:[%s3482_s1] sm:$0xff] }
  0x17   :  { %2571 = vmatpush3.bf16.msra.mxu0 %v2568_v59  ;;  %2547 = vmatpush3.bf16.msra.mxu1 %v3024_v11  ;;  %v283_v53 = vand.u32 4294901760, %v282_v30  ;;  %v290_v54 = vand.u32 4294901760, %v289_v41  ;;  %v3486_v57 = vand.u32 4294901760, %v3058_v45  ;;  %v3077_v59 = vpack.c.bf16 %v87_v6, %v84_v5 }
  0x18   :  { %2573 = vmatprep.subr.bf16.mxu0 %v2572_v29  ;;  %2340 = vmatprep.mubr.f32.mxu0 %v3060_v48  ;;  %v3485_v58 = vand.u32 4294901760, %v3067_v51  ;;  %v297_v63 = vand.u32 4294901760, %v296_v44  ;;  %v304_v0 = vand.u32 4294901760, %v303_v50  ;;  %v3088_v16 = vpack.c.bf16 %v93_v43, %v90_v40 }
  0x19   :  { %2549 = vmatprep.subr.bf16.mxu1 %v3062_v49  ;;  %v310_v1 = vsub.f32 %v3058_v45, %v3486_v57  ;;  %v3095_v6 = vpack.c.bf16 %v2917_v14, %v2915_v13  ;;  %v2580_v17 = vpack.c.bf16 %v290_v54, %v283_v53  ;;  %v39_v30 = vmul.f32 %v17_v35, %v17_v35 }
  0x1a   :  { %v317_v5 = vsub.f32 %v3067_v51, %v3485_v58  ;;  %v41_v37 = vmul.f32 %v19_v56, %v19_v56  ;;  %v3099_v38 = vand.u32 4294901760, %v18_v7  ;;  %v40_v40 = vmul.f32 %v18_v7, %v18_v7 }
  0x1b   :  { %2575 = vmatpush3.bf16.msra.mxu0 %v2572_v29  ;;  %2551 = vmatpush3.bf16.msra.mxu1 %v3062_v49  ;;  %v311_v28 = vand.u32 4294901760, %v310_v1  ;;  %v42_v41 = vmul.f32 %v20_v10, %v20_v10  ;;  %v2584_v43 = vpack.c.bf16 %v304_v0, %v297_v63  ;;  %v3101_v44 = vand.u32 4294901760, %v19_v56 }
  0x1c   :  { %2577 = vmatprep.subr.bf16.mxu0 %v2576_v52  ;;  %2553 = vmatprep.subr.bf16.mxu1 %v3077_v59  ;;  %v318_v29 = vand.u32 4294901760, %v317_v5  ;;  %v43_v50 = vadd.f32 %v41_v37, %v39_v30  ;;  %v45_v58 = vmul.f32 %v19_v56, %v17_v35  ;;  %v3103_v57 = vand.u32 4294901760, %v20_v10 }
  0x1d   :  { %v44_v42 = vadd.f32 %v42_v41, %v40_v40  ;;  %v46_v53 = vmul.f32 %v20_v10, %v18_v7  ;;  %v3106_v54 = vsub.f32 %v17_v35, %v3060_v48  ;;  %v3113_v63 = vsub.f32 %v18_v7, %v3099_v38 }
  0x1e   :  { %v2588_v1 = vpack.c.bf16 %v318_v29, %v311_v28  ;;  %v3108_v5 = vand.u32 4294901760, %v43_v50  ;;  %v3110_v39 = vand.u32 4294901760, %v45_v58  ;;  %v3126_v35 = vpack.c.bf16 %v218_v22, %v211_v21 }
  0x1f   :  { %2579 = vmatpush3.bf16.msra.mxu0 %v2576_v52  ;;  %2555 = vmatpush3.bf16.msra.mxu1 %v3077_v59  ;;  %v3116_v0 = vand.u32 4294901760, %v44_v42  ;;  %v3119_v52 = vsub.f32 %v19_v56, %v3101_v44  ;;  %v130_v30 = vand.u32 4294901760, %v3106_v54  ;;  %v3130_v7 = vsub.f32 %v20_v10, %v3103_v57 }
  0x20   :  { %2581 = vmatprep.subr.bf16.mxu0 %v2580_v17  ;;  %2557 = vmatprep.subr.bf16.mxu1 %v3088_v16  ;;  %v3133_v28 = vsub.f32 %v43_v50, %v3108_v5  ;;  %v3136_v37 = vsub.f32 %v45_v58, %v3110_v39  ;;  %v140_v56 = vand.u32 4294901760, %v3113_v63  ;;  %v3146_v14 = vpack.c.bf16 %v232_v25, %v225_v23 }
  0x21   :  { %v3140_v13 = vsub.f32 %v44_v42, %v3116_v0  ;;  %v3152_v21 = vpack.c.bf16 %v246_v32, %v239_v26  ;;  %v131_v22 = vsub.f32 %v3106_v54, %v130_v30  ;;  %v3157_v58 = vand.u32 4294901760, %v46_v53 }
  0x22   :  { %v141_v23 = vsub.f32 %v3113_v63, %v140_v56  ;;  %v3167_v25 = vpack.c.bf16 %v260_v55, %v253_v46  ;;  %v3173_v26 = vpack.c.bf16 %v274_v4, %v267_v3  ;;  %v150_v42 = vand.u32 4294901760, %v3119_v52 }
  0x23   :  { %2583 = vmatpush3.bf16.msra.mxu0 %v2580_v17  ;;  %2559 = vmatpush3.bf16.msra.mxu1 %v3088_v16  ;;  %v132_v32 = vand.u32 4294901760, %v131_v22  ;;  %v160_v10 = vand.u32 4294901760, %v3130_v7  ;;  %v3182_v17 = vpack.c.bf16 %v288_v31, %v281_v8  ;;  %v3490_v55 = vand.u32 4294901760, %v3133_v28 }
  0x24   :  { %2585 = vmatprep.subr.bf16.mxu0 %v2584_v43  ;;  %2768 = vmatprep.subr.bf16.mxu1 %v2913_v12  ;;  %v142_v46 = vand.u32 4294901760, %v141_v23  ;;  %v3489_v29 = vand.u32 4294901760, %v3140_v13  ;;  %v3491_v3 = vand.u32 4294901760, %v3033_v27  ;;  %v3492_v4 = vand.u32 4294901760, %v3043_v33 }
  0x25   :  { %2296 = vmatprep.mubr.f32.mxu1 %v132_v32  ;;  %v190_v41 = vand.u32 4294901760, %v3136_v37  ;;  %v3493_v50 = vand.u32 4294901760, %v3058_v45  ;;  %v3494_v8 = vand.u32 4294901760, %v3067_v51  ;;  %v151_v22 = vsub.f32 %v3119_v52, %v150_v42 }
  0x26   :  { %v3190_v40 = vpack.c.bf16 %v3492_v4, %v3491_v3  ;;  %v161_v23 = vsub.f32 %v3130_v7, %v160_v10  ;;  %2297 = vmatmul.mubr.f32.vlgmr.msra.gmra.mrb[0].mxu1 %v142_v46  ;;  %v171_v32 = vsub.f32 %v3133_v28, %v3490_v55  ;;  %v181_v3 = vsub.f32 %v3140_v13, %v3489_v29 }
  0x27   :  { %2587 = vmatpush3.bf16.msra.mxu0 %v2584_v43  ;;  %v3197_v31 = vpack.c.bf16 %v3494_v8, %v3493_v50  ;;  %v3206_v43 = vsub.f32 %v46_v53, %v3157_v58  ;;  %2776 = vmatpush3.bf16.msra.mxu1 %v2913_v12  ;;  %v152_v4 = vand.u32 4294901760, %v151_v22  ;;  %v191_v8 = vsub.f32 %v3136_v37, %v190_v41 }
  0x28   :  { %2589 = vmatprep.subr.bf16.mxu0 %v2588_v1  ;;  %v162_v50 = vand.u32 4294901760, %v161_v23  ;;  %2769 = vmatprep.subr.bf16.mxu1 %v2927_v18  ;;  %v172_v46 = vand.u32 4294901760, %v171_v32  ;;  %v2596_v29 = vpack.c.bf16 %v2929_v19, %v2919_v15  ;;  %v182_v55 = vand.u32 4294901760, %v181_v3 }
  0x29   :  { %v200_v53 = vand.u32 4294901760, %v3206_v43  ;;  %2299 = vmatprep.mubr.f32.mxu1 %v152_v4  ;;  %v192_v23 = vand.u32 4294901760, %v191_v8  ;;  %v2600_v15 = vpack.c.bf16 %v2936_v24, %v2931_v20  ;;  %v2608_v20 = vpack.c.bf16 %v3004_v62, %v3002_v61 }
  0x2a   :  { %2300 = vmatmul.mubr.f32.gmra.mrb[2].mxu1 %v162_v50  ;;  %v2612_v24 = vpack.c.bf16 %v3019_v9, %v3010_v2  ;;  %v3495_v61 = vand.u32 4294901760, %v3133_v28  ;;  %v3496_v62 = vand.u32 4294901760, %v3140_v13 }
  0x2b   :  { %2591 = vmatpush3.bf16.msra.mxu0 %v2588_v1  ;;  %v201_v22 = vsub.f32 %v3206_v43, %v200_v53  ;;  %2777 = vmatpush3.bf16.msra.mxu1 %v2927_v18 }
  0x2c   :  { %2593 = vmatprep.subr.bf16.mxu0 %v3095_v6  ;;  %2302 = vmatprep.mubr.f32.mxu1 %v172_v46 }
  0x2d   :  { %2770 = vmatprep.subr.bf16.mxu1 %v2956_v34  ;;  %v202_v19 = vand.u32 4294901760, %v201_v22  ;;  %v38_v22 = vld [vmem:[%s3483_s3 + $0x8] sm:$0xff] }
  0x2e   :  { %2341 = vmatmul.mubr.f32.vlgmr.msra.gmra.mrb[0].mxu0 %v3099_v38  ;;  %2303 = vmatmul.mubr.f32.gmra.mrb[4].mxu1 %v182_v55 }
  0x2f   :  { %2595 = vmatpush3.bf16.msra.mxu0 %v3095_v6  ;;  %2343 = vmatprep.mubr.f32.mxu0 %v3101_v44  ;;  %v2604_v6 = vpack.c.bf16 %v2978_v47, %v2961_v36  ;;  %v2616_v36 = vpack.c.bf16 %v3043_v33, %v3033_v27  ;;  %v2620_v47 = vpack.c.bf16 %v3067_v51, %v3058_v45  ;;  %v2869_v33 = vmov 0.0  }
  0x30   :  { %2597 = vmatprep.subr.bf16.mxu0 %v2596_v29  ;;  %2778 = vmatpush3.bf16.msra.mxu1 %v2956_v34 }
  0x31   :  { %2305 = vmatprep.mubr.f32.mxu1 %v192_v23  ;;  %2771 = vmatprep.subr.bf16.mxu1 %v3000_v60 }
  0x32   :  { %2344 = vmatmul.mubr.f32.gmra.mrb[2].mxu0 %v3103_v57  ;;  %2306 = vmatmul.mubr.f32.gmra.mrb[6].mxu1 %v202_v19 }
  0x33   :  { %2599 = vmatpush3.bf16.msra.mxu0 %v2596_v29  ;;  %2346 = vmatprep.mubr.f32.mxu0 %v3108_v5 }
  0x34   :  { %2601 = vmatprep.subr.bf16.mxu0 %v2600_v15  ;;  %2779 = vmatpush3.bf16.msra.mxu1 %v3000_v60 }
  0x35   :  { %2522 = vmatprep.mubr.f32.mxu1 %v3108_v5  ;;  %2772 = vmatprep.subr.bf16.mxu1 %v3024_v11 }
  0x36   :  { %2347 = vmatmul.mubr.f32.gmra.mrb[4].mxu0 %v3116_v0 }
  0x37   :  { %2603 = vmatpush3.bf16.msra.mxu0 %v2600_v15  ;;  %2349 = vmatprep.mubr.f32.mxu0 %v3110_v39 }
  0x38   :  { %2605 = vmatprep.subr.bf16.mxu0 %v2604_v6  ;;  %2780 = vmatpush3.bf16.msra.mxu1 %v3024_v11 }
  0x39   :  { %2773 = vmatprep.subr.bf16.mxu1 %v3062_v49 }
  0x3a   :  { %2350 = vmatmul.mubr.f32.gmra.mrb[6].mxu0 %v3157_v58 }
  0x3b   :  { %2607 = vmatpush3.bf16.msra.mxu0 %v2604_v6  ;;  %2384 = vmatprep.mubr.f32.mxu0 %v3106_v54  ;;  %v994_v6 = vsel %vm989_vm0, %v38_v22, 0 }
  0x3c   :  { %2609 = vmatprep.subr.bf16.mxu0 %v2608_v20  ;;  %2781 = vmatpush3.bf16.msra.mxu1 %v3062_v49 }
  0x3d   :  { %2774 = vmatprep.subr.bf16.mxu1 %v3077_v59 }
  0x3f   :  { %2611 = vmatpush3.bf16.msra.mxu0 %v2608_v20 }
  0x40   :  { %2613 = vmatprep.subr.bf16.mxu0 %v2612_v24  ;;  %2782 = vmatpush3.bf16.msra.mxu1 %v3077_v59 }
  0x41   :  { %2775 = vmatprep.subr.bf16.mxu1 %v3088_v16 }
  0x43   :  { %2615 = vmatpush3.bf16.msra.mxu0 %v2612_v24 }
  0x44   :  { %2617 = vmatprep.subr.bf16.mxu0 %v2616_v36  ;;  %2783 = vmatpush3.bf16.msra.mxu1 %v3088_v16 }
  0x47   :  { %2619 = vmatpush3.bf16.msra.mxu0 %v2616_v36  ;;  %2523 = vmatmul.mubr.f32.vlgmr.msra.gmra.mrb[8].mxu1 %v3116_v0  ;;  %v3399_v36 = vand.u32 4294901760, %v994_v6 }
  0x48   :  { %2621 = vmatprep.subr.bf16.mxu0 %v2620_v47  ;;  %2525 = vmatprep.mubr.f32.mxu1 %v3110_v39 }
  0x4b   :  { %2623 = vmatpush3.bf16.msra.mxu0 %v2620_v47  ;;  %2526 = vmatmul.mubr.f32.gmra.mrb[10].mxu1 %v3157_v58 }
  0x4c   :  { %2625 = vmatprep.subr.bf16.mxu0 %v2913_v12  ;;  %1064 = vmatprep.mubr.f32.mxu1 %v2869_v33 }
  0x4e   :  { %2385 = vmatmul.mubr.f32.vlgmr.msra.gmra.mrb[0].mxu0 %v3113_v63 }
  0x4f   :  { %2627 = vmatpush3.bf16.msra.mxu0 %v2913_v12  ;;  %2387 = vmatprep.mubr.f32.mxu0 %v3119_v52 }
  0x50   :  { %2629 = vmatprep.subr.bf16.mxu0 %v2927_v18 }
  0x52   :  { %2388 = vmatmul.mubr.f32.gmra.mrb[2].mxu0 %v3130_v7 }
  0x53   :  { %2631 = vmatpush3.bf16.msra.mxu0 %v2927_v18  ;;  %2390 = vmatprep.mubr.f32.mxu0 %v3133_v28 }
  0x54   :  { %2633 = vmatprep.subr.bf16.mxu0 %v2956_v34 }
  0x56   :  { %2391 = vmatmul.mubr.f32.gmra.mrb[4].mxu0 %v3140_v13 }
  0x57   :  { %2635 = vmatpush3.bf16.msra.mxu0 %v2956_v34  ;;  %2393 = vmatprep.mubr.f32.mxu0 %v3136_v37 }
  0x58   :  { %2637 = vmatprep.subr.bf16.mxu0 %v3000_v60 }
  0x5a   :  { %2394 = vmatmul.mubr.f32.gmra.mrb[6].mxu0 %v3206_v43 }
  0x5b   :  { %2639 = vmatpush3.bf16.msra.mxu0 %v3000_v60  ;;  %2428 = vmatprep.mubr.f32.mxu0 %v130_v30 }
  0x5c   :  { %2641 = vmatprep.subr.bf16.mxu0 %v3024_v11 }
  0x5f   :  { %2643 = vmatpush3.bf16.msra.mxu0 %v3024_v11 }
  0x60   :  { %2645 = vmatprep.subr.bf16.mxu0 %v3062_v49 }
  0x63   :  { %2647 = vmatpush3.bf16.msra.mxu0 %v3062_v49 }
  0x64   :  { %2649 = vmatprep.subr.bf16.mxu0 %v3077_v59 }
  0x67   :  { %2651 = vmatpush3.bf16.msra.mxu0 %v3077_v59 }
  0x68   :  { %2653 = vmatprep.subr.bf16.mxu0 %v3088_v16 }
  0x6b   :  { %2655 = vmatpush3.bf16.msra.mxu0 %v3088_v16 }
  0x6c   :  { %2657 = vmatprep.subr.bf16.mxu0 %v3126_v35 }
  0x6e   :  { %2429 = vmatmul.mubr.f32.vlgmr.msra.gmra.mrb[0].mxu0 %v140_v56 }
  0x6f   :  { %2659 = vmatpush3.bf16.msra.mxu0 %v3126_v35  ;;  %2431 = vmatprep.mubr.f32.mxu0 %v150_v42 }
  0x70   :  { %2661 = vmatprep.subr.bf16.mxu0 %v3146_v14 }
  0x72   :  { %2432 = vmatmul.mubr.f32.gmra.mrb[2].mxu0 %v160_v10 }
  0x73   :  { %2663 = vmatpush3.bf16.msra.mxu0 %v3146_v14  ;;  %2434 = vmatprep.mubr.f32.mxu0 %v3495_v61 }
  0x74   :  { %2665 = vmatprep.subr.bf16.mxu0 %v3152_v21 }
  0x76   :  { %2435 = vmatmul.mubr.f32.gmra.mrb[4].mxu0 %v3496_v62 }
  0x77   :  { %2667 = vmatpush3.bf16.msra.mxu0 %v3152_v21  ;;  %2437 = vmatprep.mubr.f32.mxu0 %v190_v41  ;;  %v37_v41 = vld [vmem:[%s3483_s3] sm:$0xff] }
  0x78   :  { %2669 = vmatprep.subr.bf16.mxu0 %v3167_v25  ;;  %v991_v4 = vsel %vm989_vm0, %v37_v41, 0 }
  0x79   :  { %v3392_v15 = vand.u32 4294901760, %v991_v4 }
  0x7a   :  { %2438 = vmatmul.mubr.f32.gmra.mrb[6].mxu0 %v200_v53 }
  0x7b   :  { %2671 = vmatpush3.bf16.msra.mxu0 %v3167_v25  ;;  %2472 = vmatprep.mubr.f32.mxu0 %v3060_v48  ;;  %v3397_v20 = vsub.f32 %v991_v4, %v3392_v15 }
  0x7c   :  { %2673 = vmatprep.subr.bf16.mxu0 %v3173_v26 }
  0x7f   :  { %2675 = vmatpush3.bf16.msra.mxu0 %v3173_v26 }
  0x80   :  { %2677 = vmatprep.subr.bf16.mxu0 %v3182_v17 }
  0x83   :  { %2679 = vmatpush3.bf16.msra.mxu0 %v3182_v17 }
  0x84   :  { %2681 = vmatprep.subr.bf16.mxu0 %v3190_v40 }
  0x87   :  { %2683 = vmatpush3.bf16.msra.mxu0 %v3190_v40 }
  0x88   :  { %2685 = vmatprep.subr.bf16.mxu0 %v3197_v31 }
  0x8b   :  { %2687 = vmatpush3.bf16.msra.mxu0 %v3197_v31 }
  0x8c   :  { %2689 = vmatprep.subr.bf16.mxu0 %v2913_v12 }
  0x8e   :  { %2473 = vmatmul.mubr.f32.vlgmr.msra.gmra.mrb[0].mxu0 %v3099_v38 }
  0x8f   :  { %2691 = vmatpush3.bf16.msra.mxu0 %v2913_v12  ;;  %2475 = vmatprep.mubr.f32.mxu0 %v3101_v44 }
  0x90   :  { %2693 = vmatprep.subr.bf16.mxu0 %v2927_v18 }
  0x92   :  { %2476 = vmatmul.mubr.f32.gmra.mrb[2].mxu0 %v3103_v57 }
  0x93   :  { %2695 = vmatpush3.bf16.msra.mxu0 %v2927_v18  ;;  %2478 = vmatprep.mubr.f32.mxu0 %v3108_v5 }
  0x94   :  { %2697 = vmatprep.subr.bf16.mxu0 %v2956_v34 }
  0x96   :  { %2479 = vmatmul.mubr.f32.gmra.mrb[4].mxu0 %v3116_v0 }
  0x97   :  { %2699 = vmatpush3.bf16.msra.mxu0 %v2956_v34  ;;  %2481 = vmatprep.mubr.f32.mxu0 %v3110_v39 }
  0x98   :  { %2701 = vmatprep.subr.bf16.mxu0 %v3000_v60 }
  0x9a   :  { %2482 = vmatmul.mubr.f32.gmra.mrb[6].mxu0 %v3157_v58 }
  0x9b   :  { %2703 = vmatpush3.bf16.msra.mxu0 %v3000_v60  ;;  %2516 = vmatprep.mubr.f32.mxu0 %v3060_v48 }
  0x9c   :  { %2705 = vmatprep.subr.bf16.mxu0 %v3024_v11 }
  0x9f   :  { %2707 = vmatpush3.bf16.msra.mxu0 %v3024_v11 }
  0xa0   :  { %2709 = vmatprep.subr.bf16.mxu0 %v3062_v49 }
  0xa3   :  { %2711 = vmatpush3.bf16.msra.mxu0 %v3062_v49 }
  0xa4   :  { %2713 = vmatprep.subr.bf16.mxu0 %v3077_v59 }
  0xa7   :  { %2715 = vmatpush3.bf16.msra.mxu0 %v3077_v59 }
  0xa8   :  { %2717 = vmatprep.subr.bf16.mxu0 %v3088_v16 }
  0xab   :  { %2719 = vmatpush3.bf16.msra.mxu0 %v3088_v16 }
  0xae   :  { %2517 = vmatmul.mubr.f32.vlgmr.msra.gmra.mrb[0].mxu0 %v3099_v38 }
  0xaf   :  { %2519 = vmatprep.mubr.f32.mxu0 %v3101_v44 }
  0xb2   :  { %2520 = vmatmul.mubr.f32.gmra.mrb[2].mxu0 %v3103_v57 }
  0xf9   :  { %v3347_v12 = vpop.f32.mrb[0].mxu1 }
  0xfa   :  { %v3349_v18 = vpop.f32.mrb[1].mxu1 }
  0xfd   :  { %v3351_v34 = vpop.f32.mrb[2].mxu1 }
  0xfe   :  { %v3353_v60 = vpop.f32.mrb[3].mxu1 }
 0x101   :  { %v2304_v2 = vpop.f32.mrb[4].mxu1 }
 0x102   :  { %v174_v9 = vpop.f32.mrb[5].mxu1 }
 0x105   :  { %v2307_v11 = vpop.f32.mrb[6].mxu1 }
 0x106   :  { %v194_v27 = vpop.f32.mrb[7].mxu1 }
 0x11a   :  { %v2524_v39 = vpop.f32.mrb[8].mxu1 }
 0x11b   :  { %v967_v45 = vpop.f32.mrb[9].mxu1 }
 0x11e   :  { %v2527_v48 = vpop.f32.mrb[10].mxu1 }
 0x11f   :  { %v979_v49 = vpop.f32.mrb[11].mxu1 }
 0x169   :  { %v2480_v51 = vpop.f32.mrb[4].mxu0 }
 0x16a   :  { %v2788_v57 = vadd.f32 %v2480_v51, %v2304_v2  ;;  %v838_v59 = vpop.f32.mrb[5].mxu0 }
 0x16b   :  { %v2790_v16 = vadd.f32 %v838_v59, %v174_v9  ;;  %v3404_v9 = vand.u32 4294901760, %v3397_v20 }
 0x16c   :  { %v2789_v38 = vadd.f32 %v2788_v57, %v2524_v39  ;;  %v3407_v39 = vsub.f32 %v994_v6, %v3399_v36 }
 0x16d   :  { %v2791_v44 = vadd.f32 %v2790_v16, %v967_v45  ;;  %v2483_v54 = vpop.f32.mrb[6].mxu0 }
 0x16e   :  { %v1542_v1 = vand.u32 4294901760, %v2789_v38  ;;  %v2792_v5 = vadd.f32 %v2483_v54, %v2307_v11  ;;  %v850_v63 = vpop.f32.mrb[7].mxu0 }
 0x16f   :  { %v1538_v0 = vand.u32 4294901760, %v2791_v44  ;;  %v2794_v52 = vadd.f32 %v850_v63, %v194_v27 }
 0x170   :  { %v3356_v30 = vsub.f32 %v2789_v38, %v1542_v1  ;;  %v2793_v35 = vadd.f32 %v2792_v5, %v2527_v48 }
 0x171   :  { %v3358_v7 = vpack.c.bf16 %v1542_v1, %v1538_v0  ;;  %v3360_v28 = vsub.f32 %v2791_v44, %v1538_v0  ;;  %v2795_v37 = vadd.f32 %v2794_v52, %v979_v49  ;;  %v3414_v1 = vand.u32 4294901760, %v3407_v39 }
 0x172   :  { %v1647_v56 = vand.u32 4294901760, %v3356_v30  ;;  %v1540_v13 = vand.u32 4294901760, %v2793_v35 }
 0x173   :  { %v1635_v14 = vand.u32 4294901760, %v3360_v28  ;;  %v2754_v21 = vpack.c.bf16 %v3356_v30, %v3360_v28  ;;  %v1536_v58 = vand.u32 4294901760, %v2795_v37 }
 0x174   :  { %v1648_v25 = vsub.f32 %v3356_v30, %v1647_v56  ;;  %v3367_v26 = vsub.f32 %v2793_v35, %v1540_v13 }
 0x175   :  { %v1636_v42 = vsub.f32 %v3360_v28, %v1635_v14  ;;  %v3370_v10 = vsub.f32 %v2795_v37, %v1536_v58  ;;  %v3372_v17 = vpack.c.bf16 %v1540_v13, %v1536_v58  ;;  %v3374_v55 = vpack.c.bf16 %v1647_v56, %v1635_v14 }
 0x176   :  { %v1649_v29 = vand.u32 4294901760, %v1648_v25  ;;  %v1641_v40 = vand.u32 4294901760, %v3367_v26  ;;  %v1079_v58 = vsub.f32 %v3407_v39, %v3414_v1 }
 0x177   :  { %v1637_v31 = vand.u32 4294901760, %v1636_v42  ;;  %v1629_v43 = vand.u32 4294901760, %v3370_v10  ;;  %v2752_v32 = vpack.c.bf16 %v3367_v26, %v3370_v10 }
 0x178   :  { %v1642_v3 = vsub.f32 %v3367_v26, %v1641_v40 }
 0x179   :  { %v1630_v50 = vsub.f32 %v3370_v10, %v1629_v43  ;;  %v3385_v8 = vpack.c.bf16 %v1649_v29, %v1637_v31  ;;  %v3387_v53 = vpack.c.bf16 %v1641_v40, %v1629_v43  ;;  %v1080_v43 = vand.u32 4294901760, %v1079_v58 }
 0x17a   :  { %v1643_v46 = vand.u32 4294901760, %v1642_v3 }
 0x17b   :  { %v1631_v23 = vand.u32 4294901760, %v1630_v50 }
 0x17d   :  { %v3394_v19 = vpack.c.bf16 %v1643_v46, %v1631_v23 }
 0x181   :  { %v2518_v24 = vpop.f32.mrb[0].mxu0 }
 0x182   :  { %v2784_v47 = vadd.f32 %v2518_v24, %v3347_v12  ;;  %v943_v61 = vpop.f32.mrb[1].mxu0 }
 0x183   :  { %v2785_v62 = vadd.f32 %v943_v61, %v3349_v18  ;;  %v1068_v18 = vsub.f32 %v3397_v20, %v3404_v9 }
 0x184   :  { %v1002_v2 = vand.u32 4294901760, %v2784_v47 }
 0x185   :  { %v998_v11 = vand.u32 4294901760, %v2785_v62  ;;  %v2521_v27 = vpop.f32.mrb[2].mxu0 }
 0x186   :  { %v1106_v45 = vsub.f32 %v2784_v47, %v1002_v2  ;;  %v2786_v48 = vadd.f32 %v2521_v27, %v3351_v34  ;;  %v955_v49 = vpop.f32.mrb[3].mxu0 }
 0x187   :  { %v2722_v51 = vpack.c.bf16 %v1002_v2, %v998_v11  ;;  %v1094_v57 = vsub.f32 %v2785_v62, %v998_v11  ;;  %v2787_v12 = vadd.f32 %v955_v49, %v3353_v60  ;;  %v1069_v60 = vand.u32 4294901760, %v1068_v18 }
 0x188   :  { %v1107_v59 = vand.u32 4294901760, %v1106_v45  ;;  %v1000_v16 = vand.u32 4294901760, %v2786_v48 }
 0x189   :  { %v1095_v38 = vand.u32 4294901760, %v1094_v57  ;;  %v2730_v44 = vpack.c.bf16 %v1106_v45, %v1094_v57  ;;  %v996_v54 = vand.u32 4294901760, %v2787_v12 }
 0x18a   :  { %v1108_v5 = vsub.f32 %v1106_v45, %v1107_v59  ;;  %v1100_v63 = vsub.f32 %v2786_v48, %v1000_v16 }
 0x18b   :  { %v1096_v0 = vsub.f32 %v1094_v57, %v1095_v38  ;;  %v1088_v34 = vsub.f32 %v2787_v12, %v996_v54  ;;  %v2720_v52 = vpack.c.bf16 %v1000_v16, %v996_v54  ;;  %v2738_v35 = vpack.c.bf16 %v1107_v59, %v1095_v38 }
 0x18c   :  { %v1109_v37 = vand.u32 4294901760, %v1108_v5  ;;  %v1101_v56 = vand.u32 4294901760, %v1100_v63 }
 0x18d   :  { %v1097_v13 = vand.u32 4294901760, %v1096_v0  ;;  %v1089_v14 = vand.u32 4294901760, %v1088_v34  ;;  %2721 = vmatprep.subr.bf16.mxu1 %v2720_v52  ;;  %v2728_v25 = vpack.c.bf16 %v1100_v63, %v1088_v34 }
 0x18e   :  { %2723 = vmatpush1.bf16.msra.mxu1 %v2722_v51  ;;  %v1102_v42 = vsub.f32 %v1100_v63, %v1101_v56 }
 0x18f   :  { %v1090_v29 = vsub.f32 %v1088_v34, %v1089_v14  ;;  %v2726_v40 = vpack.c.bf16 %v1109_v37, %v1097_v13  ;;  %v2736_v41 = vpack.c.bf16 %v1101_v56, %v1089_v14 }
 0x190   :  { %v1103_v31 = vand.u32 4294901760, %v1102_v42 }
 0x191   :  { %1070 = vmatmul.mubr.f32.vlgmr.msra.gmra.mrb[12].mxu1 %v1069_v60  ;;  %v1091_v3 = vand.u32 4294901760, %v1090_v29 }
 0x192   :  { %1075 = vmatprep.mubr.f32.mxu1 %v2869_v33 }
 0x193   :  { %v2724_v4 = vpack.c.bf16 %v1103_v31, %v1091_v3 }
 0x195   :  { %1081 = vmatmul.mubr.f32.gmra.mrb[14].mxu1 %v1080_v43  ;;  %2725 = vmatprep.subr.bf16.mxu1 %v2724_v4 }
 0x196   :  { %2727 = vmatpush1.bf16.msra.mxu1 %v2726_v40  ;;  %1171 = vmatprep.mubr.f32.mxu1 %v2869_v33 }
 0x197   :  { %2729 = vmatprep.subr.bf16.mxu1 %v2728_v25 }
 0x199   :  { %1173 = vmatmul.mubr.f32.vlgmr.msra.gmra.mrb[12].mxu1 %v3392_v15 }
 0x19a   :  { %2731 = vmatpush1.bf16.msra.mxu1 %v2730_v44  ;;  %1178 = vmatprep.mubr.f32.mxu1 %v2869_v33 }
 0x19b   :  { %2733 = vmatprep.subr.bf16.mxu1 %v2720_v52 }
 0x19d   :  { %1180 = vmatmul.mubr.f32.gmra.mrb[14].mxu1 %v3399_v36 }
 0x19e   :  { %1258 = vmatprep.mubr.f32.mxu1 %v2869_v33 }
 0x1a1   :  { %1261 = vmatmul.mubr.f32.vlgmr.msra.gmra.mrb[12].mxu1 %v3397_v20 }
 0x1a2   :  { %2735 = vmatpush1.bf16.msra.mxu1 %v2722_v51  ;;  %1266 = vmatprep.mubr.f32.mxu1 %v2869_v33 }
 0x1a3   :  { %2737 = vmatprep.subr.bf16.mxu1 %v2736_v41 }
 0x1a5   :  { %1269 = vmatmul.mubr.f32.gmra.mrb[14].mxu1 %v3407_v39 }
 0x1a6   :  { %1343 = vmatprep.mubr.f32.mxu1 %v2869_v33 }
 0x1a9   :  { %1347 = vmatmul.mubr.f32.vlgmr.msra.gmra.mrb[12].mxu1 %v3404_v9 }
 0x1aa   :  { %2739 = vmatpush1.bf16.msra.mxu1 %v2738_v35  ;;  %1352 = vmatprep.mubr.f32.mxu1 %v2869_v33 }
 0x1ab   :  { %2741 = vmatprep.subr.bf16.mxu1 %v2720_v52 }
 0x1ad   :  { %1356 = vmatmul.mubr.f32.gmra.mrb[14].mxu1 %v3414_v1 }
 0x1ae   :  { %1438 = vmatprep.mubr.f32.mxu1 %v2869_v33 }
 0x1b1   :  { %1440 = vmatmul.mubr.f32.vlgmr.msra.gmra.mrb[12].mxu1 %v3392_v15 }
 0x1b2   :  { %2743 = vmatpush1.bf16.msra.mxu1 %v2722_v51  ;;  %1445 = vmatprep.mubr.f32.mxu1 %v2869_v33 }
 0x1b3   :  { %2745 = vmatprep.subr.bf16.mxu1 %v3372_v17 }
 0x1b5   :  { %1447 = vmatmul.mubr.f32.gmra.mrb[14].mxu1 %v3399_v36 }
 0x1b6   :  { %1521 = vmatprep.mubr.f32.mxu1 %v2869_v33 }
 0x1b9   :  { %1523 = vmatmul.mubr.f32.vlgmr.msra.gmra.mrb[12].mxu1 %v3392_v15 }
 0x1ba   :  { %2747 = vmatpush1.bf16.msra.mxu1 %v3358_v7  ;;  %1528 = vmatprep.mubr.f32.mxu1 %v2869_v33 }
 0x1bb   :  { %2749 = vmatprep.subr.bf16.mxu1 %v3394_v19 }
 0x1bd   :  { %1530 = vmatmul.mubr.f32.gmra.mrb[14].mxu1 %v3399_v36 }
 0x1be   :  { %1604 = vmatprep.mubr.f32.mxu1 %v2869_v33 }
 0x1c1   :  { %1610 = vmatmul.mubr.f32.vlgmr.msra.gmra.mrb[16].mxu1 %v1069_v60 }
 0x1c2   :  { %2751 = vmatpush1.bf16.msra.mxu1 %v3385_v8  ;;  %1615 = vmatprep.mubr.f32.mxu1 %v2869_v33 }
 0x1c3   :  { %2753 = vmatprep.subr.bf16.mxu1 %v2752_v32 }
 0x1c5   :  { %1621 = vmatmul.mubr.f32.gmra.mrb[18].mxu1 %v1080_v43 }
 0x1c6   :  { %1711 = vmatprep.mubr.f32.mxu1 %v2869_v33 }
 0x1c9   :  { %1713 = vmatmul.mubr.f32.vlgmr.msra.gmra.mrb[16].mxu1 %v3392_v15 }
 0x1ca   :  { %2755 = vmatpush1.bf16.msra.mxu1 %v2754_v21  ;;  %1718 = vmatprep.mubr.f32.mxu1 %v2869_v33 }
 0x1cb   :  { %2757 = vmatprep.subr.bf16.mxu1 %v3372_v17 }
 0x1cd   :  { %1720 = vmatmul.mubr.f32.gmra.mrb[18].mxu1 %v3399_v36 }
 0x1ce   :  { %1798 = vmatprep.mubr.f32.mxu1 %v2869_v33 }
 0x1d1   :  { %1801 = vmatmul.mubr.f32.vlgmr.msra.gmra.mrb[16].mxu1 %v3397_v20 }
 0x1d2   :  { %2759 = vmatpush1.bf16.msra.mxu1 %v3358_v7  ;;  %1806 = vmatprep.mubr.f32.mxu1 %v2869_v33 }
 0x1d3   :  { %2761 = vmatprep.subr.bf16.mxu1 %v3387_v53 }
 0x1d5   :  { %1809 = vmatmul.mubr.f32.gmra.mrb[18].mxu1 %v3407_v39 }
 0x1d6   :  { %1883 = vmatprep.mubr.f32.mxu1 %v2869_v33 }
 0x1d9   :  { %1887 = vmatmul.mubr.f32.vlgmr.msra.gmra.mrb[16].mxu1 %v3404_v9 }
 0x1da   :  { %2763 = vmatpush1.bf16.msra.mxu1 %v3374_v55  ;;  %1892 = vmatprep.mubr.f32.mxu1 %v2869_v33 }
 0x1db   :  { %2765 = vmatprep.subr.bf16.mxu1 %v3372_v17 }
 0x1dd   :  { %1896 = vmatmul.mubr.f32.gmra.mrb[18].mxu1 %v3414_v1 }
 0x1de   :  { %1978 = vmatprep.mubr.f32.mxu1 %v2869_v33 }
 0x1e1   :  { %1980 = vmatmul.mubr.f32.vlgmr.msra.gmra.mrb[16].mxu1 %v3392_v15 }
 0x1e2   :  { %2767 = vmatpush1.bf16.msra.mxu1 %v3358_v7  ;;  %1985 = vmatprep.mubr.f32.mxu1 %v2869_v33 }
 0x1e5   :  { %1987 = vmatmul.mubr.f32.gmra.mrb[18].mxu1 %v3399_v36 }
 0x1e6   :  { %2061 = vmatprep.mubr.f32.mxu1 %v2869_v33 }
 0x1e9   :  { %2063 = vmatmul.mubr.f32.vlgmr.msra.gmra.mrb[16].mxu1 %v3392_v15 }
 0x1ea   :  { %2068 = vmatprep.mubr.f32.mxu1 %v2869_v33 }
 0x1ed   :  { %2070 = vmatmul.mubr.f32.gmra.mrb[18].mxu1 %v3399_v36 }
 0x28c   :  { %v1524_v30 = vpop.f32.mrb[12].mxu1 }
 0x28d   :  { %v2076_v28 = vmul.f32 %v1524_v30, %v1524_v30  ;;  %v1526_v21 = vpop.f32.mrb[13].mxu1 }
 0x28e   :  { %v2078_v26 = vmul.f32 %v1526_v21, %v1526_v21  ;;  %v2080_v10 = vmul.f32 %v1526_v21, %v1524_v30 }
 0x290   :  { %v1531_v17 = vpop.f32.mrb[14].mxu1  ;;  %v2082_v55 = vadd.f32 %v2078_v26, %v2076_v28  ;;  %v2088_v15 = vmul.f32 2.0, %v2080_v10 }
 0x291   :  { %v2077_v7 = vmul.f32 %v1531_v17, %v1531_v17  ;;  %v1533_v32 = vpop.f32.mrb[15].mxu1 }
 0x292   :  { %v2079_v50 = vmul.f32 %v1533_v32, %v1533_v32  ;;  %v2081_v8 = vmul.f32 %v1533_v32, %v1531_v17  ;;  %v2098_v33 = vadd.f32 0.0001, %v2082_v55  ;;  %v2090_v62 = vadd.f32 0.0001, %v2088_v15 }
 0x294   :  { %v2083_v53 = vadd.f32 %v2079_v50, %v2077_v7  ;;  %v2089_v2 = vmul.f32 2.0, %v2081_v8 }
 0x296   :  { %v2099_v27 = vadd.f32 0.0001, %v2083_v53  ;;  %v2091_v51 = vadd.f32 0.0001, %v2089_v2 }
 0x2bc   :  { %v2064_v46 = vpop.f32.mrb[16].mxu1 }
 0x2bd   :  { %v2084_v22 = vsub.f32 %v2064_v46, %v2082_v55  ;;  %v2066_v23 = vpop.f32.mrb[17].mxu1 }
 0x2be   :  { %v2086_v19 = vsub.f32 %v2066_v23, %v2080_v10 }
 0x2bf   :  { %v2100_v6 = vadd.f32 0.0009, %v2084_v22 }
 0x2c0   :  { %v2092_v20 = vmul.f32 2.0, %v2086_v19  ;;  %v2071_v24 = vpop.f32.mrb[18].mxu1 }
 0x2c1   :  { %v2102_v36 = vmul.f32 %v2100_v6, %v2098_v33  ;;  %v2085_v47 = vsub.f32 %v2071_v24, %v2083_v53  ;;  %v2073_v61 = vpop.f32.mrb[19].mxu1 }
 0x2c2   :  { %v2094_v9 = vadd.f32 0.0009, %v2092_v20  ;;  %v2087_v11 = vsub.f32 %v2073_v61, %v2081_v8 }
 0x2c3   :  { %2865 = vrcp.f32 %v2102_v36  ;;  %v2101_v39 = vadd.f32 0.0009, %v2085_v47 }
 0x2c4   :  { %v2096_v45 = vmul.f32 %v2094_v9, %v2090_v62  ;;  %v2093_v48 = vmul.f32 2.0, %v2087_v11 }
 0x2c5   :  { %v2103_v49 = vmul.f32 %v2101_v39, %v2099_v27 }
 0x2c6   :  { %v2095_v57 = vadd.f32 0.0009, %v2093_v48 }
 0x2c7   :  { %2867 = vrcp.f32 %v2103_v49 }
 0x2c8   :  { %v2097_v12 = vmul.f32 %v2095_v57, %v2091_v51 }
 0x2cd   :  { %v2866_v59 = vpop.eup %2865 }
 0x2ce   :  { %v2105_v16 = vmul.f32 %v2866_v59, %v2096_v45 }
 0x2d1   :  { %v2868_v18 = vpop.eup %2867 }
 0x2d2   :  { %v2107_v38 = vmul.f32 %v2868_v18, %v2097_v12 }
 0x2d4   :  { %v2108_v44 = vadd.f32 %v2107_v38, %v2105_v16 }
 0x2d6   :  { %v2109_v54 = vrot.slane %v2108_v44, 4 }
 0x2d8   :  { %v2110_v1 = vadd.f32 %v2109_v54, %v2108_v44 }
 0x2da   :  { %v2111_v5 = vrot.slane %v2110_v1, 2 }
 0x2dc   :  { %v2112_v63 = vadd.f32 %v2111_v5, %v2110_v1 }
 0x2de   :  { %v2113_v0 = vrot.slane %v2112_v63, 1 }
 0x2e0   :  { %v2114_v34 = vadd.f32 %v2113_v0, %v2112_v63 }
 0x2e2   :  { %2115 = vst [vmem:[%s3484_s4] sm:$0x1] %v2114_v34 }

</bundles_post_ra>
